<compile_context>
chip_gen: v6e
topology: v6e:2x2x1
jax: 0.10.0
libtpu: 0.0.40
codegen_flags: <defaults>
</compile_context>

<pallas_src>
import functools

import jax
import jax.numpy as jnp
from jax.experimental import pallas as pl
from jax.experimental.pallas import tpu as pltpu


def _round_up(x, m):
    return ((x + m - 1) // m) * m


# ---------------------------------------------------------------------------
# Kernel 1: XW = X @ W   (row-tiled; W fully resident in VMEM)
# ---------------------------------------------------------------------------
def xw_kernel(x_ref, w_ref, o_ref):
    o_ref[...] = jnp.dot(x_ref[...], w_ref[...],
                         preferred_element_type=jnp.float32).astype(o_ref.dtype)


# ---------------------------------------------------------------------------
# Kernel 2: out = PReLU(A_hat @ XW + bias), block-sparse over A_hat's blocks.
#   Scalar-prefetch args (SMEM):
#     blkmap_ref [num_m * max_blk] int32 : nonzero column-block ids, padded by
#                                          repeating the last valid id
#     cnt_ref    [num_m]           int32 : number of valid blocks per row tile
# ---------------------------------------------------------------------------
def agg_kernel(blkmap_ref, cnt_ref, a_ref, xw_ref, ba_ref, o_ref, acc_ref,
               *, tk, max_blk, xw_resident):
    i = pl.program_id(0)
    k = pl.program_id(1)

    @pl.when(k == 0)
    def _():
        acc_ref[...] = jnp.zeros_like(acc_ref)

    # Only accumulate real (nonzero) blocks; padded steps repeat the previous
    # block index so their DMAs are skipped and the matmul is guarded here.
    @pl.when(k < cnt_ref[i])
    def _():
        if xw_resident:
            blk = blkmap_ref[i * max_blk + k]
            off = pl.multiple_of(blk * tk, tk)
            xw = xw_ref[pl.ds(off, tk), :]
        else:
            xw = xw_ref[...]
        acc_ref[...] += jnp.dot(a_ref[...], xw,
                                preferred_element_type=jnp.float32)

    @pl.when(k == pl.num_programs(1) - 1)
    def _():
        bias = ba_ref[0:1, :]        # (1, H) f32
        alpha = ba_ref[1:2, :]       # (1, H) f32
        act = acc_ref[...] + bias
        o_ref[...] = jnp.where(act > 0, act, alpha * act).astype(o_ref.dtype)


# ---------------------------------------------------------------------------
# Glue
# ---------------------------------------------------------------------------
def build_gcn_adjacency(edge_index, num_nodes):
    """Dense symmetric-normalized adjacency with self-loops (PyG gcn_norm)."""
    src, dst = edge_index[0], edge_index[1]
    loops = jnp.arange(num_nodes, dtype=src.dtype)
    src = jnp.concatenate([src, loops])
    dst = jnp.concatenate([dst, loops])
    ew = jnp.ones(src.shape[0], dtype=jnp.float32)
    deg = jnp.zeros((num_nodes,), jnp.float32).at[dst].add(ew)
    dinv = jnp.where(deg > 0, jax.lax.rsqrt(deg), 0.0)
    norm = dinv[src] * ew * dinv[dst]
    # aggregation out[dst] += norm * x[src]  =>  A_hat[dst, src] = norm
    a = jnp.zeros((num_nodes, num_nodes), jnp.float32).at[dst, src].add(norm)
    return a


def encoder_forward(x, edge_index, weight, bias, alpha):
    # NOTE: builds the block-sparse schedule from concrete arrays (host-side
    # int(counts.max()) for the static grid), so call it outside jit.
    n, f_in = x.shape
    h = weight.shape[1]

    # ---- lane-dense padding / tile selection (never fall back to 128) ----
    h_pad = _round_up(h, 128)
    f_pad = _round_up(f_in, 128)

    tk = 256                                   # fills the 256-wide MXU
    n_pad_min = _round_up(max(n, 1), 512)
    # Keep XW fully VMEM-resident in stage 2 when small enough (gate assumes
    # a possible 2x buffer, so it is safe even on v7x's 64 MiB/TC).
    xw_resident = n_pad_min * h_pad * 2 <= (12 << 20)

    if xw_resident:
        tm = 512
    else:
        # Bound XW read amplification (h_pad / tm) when it streams from HBM,
        # but keep f32 out double-buffers + accumulator under ~24 MiB (v7x).
        tm = 512
        while tm < 2 * h_pad and tm < 2048:
            tm *= 2
        while tm > 512 and 3 * tm * h_pad * 4 > (24 << 20):
            tm //= 2
    n_pad = _round_up(n, tm)                   # tm in {512,1024,2048} -> tk | n_pad

    # ---- padded operands (bf16 matmul inputs, f32 bias/alpha) ----
    x_pad = jnp.zeros((n_pad, f_pad), jnp.bfloat16).at[:n, :f_in].set(
        x.astype(jnp.bfloat16))
    w_pad = jnp.zeros((f_pad, h_pad), jnp.bfloat16).at[:f_in, :h].set(
        weight.astype(jnp.bfloat16))
    ba = jnp.zeros((2, h_pad), jnp.float32)
    ba = ba.at[0, :h].set(bias).at[1, :h].set(alpha)

    # ---- stage 1: XW (computed once; W resident; bf16 output) ----
    tm1 = 512
    # TODO(synk): tile the F reduction axis too if f_in is very large (>~8k).
    s1_vmem = int(1.5 * (2 * tm1 * f_pad * 2      # X bf16 double buffer
                         + 2 * f_pad * h_pad * 2  # W bf16 (budget 2x)
                         + 2 * tm1 * h_pad * 2))  # out bf16 double buffer
    s1_vmem = min(max(s1_vmem, 8 << 20), 64 << 20)

    xw = pl.pallas_call(
        xw_kernel,
        out_shape=jax.ShapeDtypeStruct((n_pad, h_pad), jnp.bfloat16),
        grid_spec=pltpu.PrefetchScalarGridSpec(
            num_scalar_prefetch=0,
            grid=(n_pad // tm1,),
            in_specs=[
                pl.BlockSpec((tm1, f_pad), lambda i: (i, 0)),     # X row panel
                pl.BlockSpec((f_pad, h_pad), lambda i: (0, 0)),   # W resident
            ],
            out_specs=pl.BlockSpec((tm1, h_pad), lambda i: (i, 0)),
        ),
        compiler_params=pltpu.CompilerParams(
            dimension_semantics=("parallel",),
            vmem_limit_bytes=s1_vmem),
    )(x_pad, w_pad)

    # ---- stage 2: block-sparse schedule for A_hat ----
    a_hat = build_gcn_adjacency(edge_index, n)                 # f32 [n, n]
    # pad + cast once directly to bf16 (no n_pad^2 f32 materialization)
    a_bf16 = jnp.zeros((n_pad, n_pad), jnp.bfloat16).at[:n, :n].set(
        a_hat.astype(jnp.bfloat16))

    num_m = n_pad // tm
    num_kb = n_pad // tk
    nz = jnp.zeros((n_pad, n_pad), jnp.bool_).at[:n, :n].set(a_hat != 0)
    nnz = jnp.any(nz.reshape(num_m, tm, num_kb, tk), axis=(1, 3))  # [num_m,num_kb]
    counts = jnp.sum(nnz, axis=1).astype(jnp.int32)                # [num_m]
    max_blk = max(int(counts.max()), 1)                            # static grid extent
    # nonzero block-column ids first (stable ascending order) ...
    order = jnp.argsort(jnp.logical_not(nnz), axis=1)[:, :max_blk].astype(jnp.int32)
    # ... padded steps repeat the LAST VALID id -> constant index_map -> no DMA
    k_idx = jnp.arange(max_blk, dtype=jnp.int32)[None, :]
    last = jnp.take_along_axis(order, jnp.maximum(counts - 1, 0)[:, None], axis=1)
    blkmap = jnp.where(k_idx < counts[:, None], order, last)
    blkmap_flat = blkmap.reshape(-1).astype(jnp.int32)     # 1-D SMEM, no 2-D padding

    if xw_resident:
        xw_spec = pl.BlockSpec((n_pad, h_pad), lambda i, k, bm, cnt: (0, 0))
        xw_vmem = 2 * n_pad * h_pad * 2
    else:
        xw_spec = pl.BlockSpec(
            (tk, h_pad), lambda i, k, bm, cnt: (bm[i * max_blk + k], 0))
        xw_vmem = 2 * tk * h_pad * 2

    vmem_bytes = (2 * tm * tk * 2          # A bf16 double buffer
                  + xw_vmem                # XW (resident or streamed)
                  + 2 * tm * h_pad * 4     # f32 output buffers
                  + tm * h_pad * 4         # f32 accumulator
                  + 2 * 2 * h_pad * 4)     # bias/alpha
    vmem_limit = min(max(2 * int(vmem_bytes), 8 << 20), 64 << 20)

    kernel = functools.partial(agg_kernel, tk=tk, max_blk=max_blk,
                               xw_resident=xw_resident)

    out_pad = pl.pallas_call(
        kernel,
        out_shape=jax.ShapeDtypeStruct((n_pad, h_pad), jnp.float32),
        grid_spec=pltpu.PrefetchScalarGridSpec(
            num_scalar_prefetch=2,
            grid=(num_m, max_blk),
            in_specs=[
                # A_hat tile: column block chosen from the prefetched list
                pl.BlockSpec((tm, tk),
                             lambda i, k, bm, cnt: (i, bm[i * max_blk + k])),
                # matching XW row-panel (or fully resident XW)
                xw_spec,
                # bias + alpha, resident across the whole grid
                pl.BlockSpec((2, h_pad), lambda i, k, bm, cnt: (0, 0)),
            ],
            out_specs=pl.BlockSpec((tm, h_pad), lambda i, k, bm, cnt: (i, 0)),
            scratch_shapes=[pltpu.VMEM((tm, h_pad), jnp.float32)],
        ),
        compiler_params=pltpu.CompilerParams(
            dimension_semantics=("parallel", "arbitrary"),
            vmem_limit_bytes=vmem_limit),
    )(blkmap_flat, counts, a_bf16, xw, ba)

    return out_pad[:n, :h]


if __name__ == "__main__":
    key = jax.random.PRNGKey(0)
    k_x, k_w = jax.random.split(key, 2)

    num_nodes = 16
    in_channels = 32
    hidden_channels = 32

    # node features
    x = jax.random.normal(k_x, (num_nodes, in_channels), dtype=jnp.float32)

    # deterministic synthetic undirected graph (ring + a few chords), symmetrized
    s = jnp.arange(num_nodes, dtype=jnp.int32)
    ring_src = s
    ring_dst = (s + 1) % num_nodes
    chord_src = jnp.array([0, 2, 4, 6], dtype=jnp.int32)
    chord_dst = jnp.array([8, 10, 12, 14], dtype=jnp.int32)
    src = jnp.concatenate([ring_src, chord_src])
    dst = jnp.concatenate([ring_dst, chord_dst])
    edge_index = jnp.stack(
        [jnp.concatenate([src, dst]), jnp.concatenate([dst, src])], axis=0)

    # parameters (GCNConv: glorot weight, zero bias; PReLU: alpha = 0.25)
    limit = (6.0 / (in_channels + hidden_channels)) ** 0.5
    weight = jax.random.uniform(
        k_w, (in_channels, hidden_channels), minval=-limit, maxval=limit,
        dtype=jnp.float32)
    bias = jnp.zeros((hidden_channels,), jnp.float32)
    alpha = jnp.full((hidden_channels,), 0.25, jnp.float32)

    out = encoder_forward(x, edge_index, weight, bias, alpha)
    out = jax.block_until_ready(out)

    # plain-JAX f32 reference (kernel uses bf16 matmul operands -> loose tol)
    a_hat = build_gcn_adjacency(edge_index, num_nodes)
    ref = a_hat @ (x @ weight) + bias[None, :]
    ref = jnp.where(ref > 0, ref, alpha[None, :] * ref)
    assert out.shape == (num_nodes, hidden_channels)
    assert jnp.allclose(out, ref, atol=3e-2, rtol=3e-2), (
        float(jnp.max(jnp.abs(out - ref))))

    print("KERNEL_OK")
</pallas_src>

<mosaic_0001>
module attributes {stable_mosaic.version = 11 : i64} {
  func.func @xw_kernel(%arg0: i32, %arg1: memref<512x128xbf16, #tpu.memory_space<vmem>>, %arg2: memref<128x128xbf16, #tpu.memory_space<vmem>>, %arg3: memref<512x128xbf16, #tpu.memory_space<vmem>>) attributes {dimension_semantics = [#tpu.dimension_semantics<parallel>], iteration_bounds = array<i64: 1>, scalar_prefetch = 0 : i64, scratch_operands = 0 : i64, tpu.core_type = #tpu.core_type<tc>, window_params = [{transform_indices = @transform_0, window_bounds = array<i64: 512, 128>}, {pipeline_mode = #tpu.pipeline_mode<synchronous>, transform_indices = @transform_1, window_bounds = array<i64: 128, 128>}, {transform_indices = @transform_2, window_bounds = array<i64: 512, 128>}]} {
    %c0 = arith.constant 0 : index
    %c0_0 = arith.constant 0 : index
    %0 = vector.load %arg1[%c0, %c0_0] : memref<512x128xbf16, #tpu.memory_space<vmem>>, vector<512x128xbf16>
    %c0_1 = arith.constant 0 : index
    %c0_2 = arith.constant 0 : index
    %1 = vector.load %arg2[%c0_1, %c0_2] : memref<128x128xbf16, #tpu.memory_space<vmem>>, vector<128x128xbf16>
    %cst = arith.constant dense<0.000000e+00> : vector<512x128xf32>
    %2 = tpu.matmul %0, %1, %cst {dimension_numbers = #tpu.dot_dimension_numbers<[1], [0], [0], [1], [0, 0, 1, 1], [], []>} : vector<512x128xbf16>, vector<128x128xbf16>, vector<512x128xf32> -> vector<512x128xf32>
    %3 = arith.truncf %2 : vector<512x128xf32> to vector<512x128xbf16>
    %c0_3 = arith.constant 0 : index
    %c0_4 = arith.constant 0 : index
    %4 = vector.load %arg3[%c0_3, %c0_4] : memref<512x128xbf16, #tpu.memory_space<vmem>>, vector<512x128xbf16>
    tpu.vector_store %arg3[%c0_3, %c0_4], %3 {strides = array<i32>} : memref<512x128xbf16, #tpu.memory_space<vmem>>, vector<512x128xbf16>,
    return
  }
  func.func @transform_0(%arg0: i32) -> (i32, i32) {
    %c0_i32 = arith.constant 0 : i32
    %c0_i32_0 = arith.constant 0 : i32
    return %arg0, %c0_i32 : i32, i32
  }
  func.func @transform_1(%arg0: i32) -> (i32, i32) {
    %c0_i32 = arith.constant 0 : i32
    %c0_i32_0 = arith.constant 0 : i32
    %c0_i32_1 = arith.constant 0 : i32
    return %c0_i32, %c0_i32_0 : i32, i32
  }
  func.func @transform_2(%arg0: i32) -> (i32, i32) {
    %c0_i32 = arith.constant 0 : i32
    %c0_i32_0 = arith.constant 0 : i32
    return %arg0, %c0_i32 : i32, i32
  }
}

</mosaic_0001>

<bundles_post_ra>
// kernel: tpu_custom_call.1
= control target key start
LH: loop header
LB: loop body
LE: loop exit
PB: predicated region body
PF: predicated region fallthrough
CT: control target
= control target key end

     0   :  { %7 = vsyncpa [#allocation3], 0  ;;  %s1632_s0 = inlined_call_operand.hbm [shape: bf16[512,128], index: 0, kind: input, shape index: {}]   ;;  %s1633_s1 = inlined_call_operand.hbm [shape: bf16[128,128], index: 1, kind: input, shape index: {}]   ;;  %s1634_s2 = inlined_call_operand.hbm [shape: bf16[512,128], index: 2, kind: output, shape index: {}]  }
   0x1   :  { %8 = vsyncpa [#allocation6], 0 }
   0x2   :  { %9 = vsyncpa [#allocation4], 0  ;;  %s1594_s9 = smov [#allocation2]  }
   0x3   :  { %s15_s10 = sshll.u32 %s1594_s9, 4  ;;  %s16_s10 = int_to_ptr.vmem [resolvable:$true] %s15_s10 }
   0x4   :  { %s1536_s11 = scalar_lea.vmem %s16_s10, 4096  ;;  %p1541_p1 = scmp.lt.s32.totalorder %s16_s10, %s16_s10 }
   0x5   :  { %p1537_p0 = scmp.ne.s32.totalorder %s16_s10, %s1536_s11  ;;  %p1542_p2 = scmp.lt.s32.totalorder %s1536_s11, %s1536_s11 }
   0x7   :  { %p1543_p3 = por %p1542_p2, %p1541_p1 }
   0x9   :  { %p1544_p4 = pnand %p1543_p3, %p1537_p0 }
   0xb   :  { %1547 = shalt.err (!%p1544_p4)
}
   0xc   :  { %s1595_s12 = smov 64   ;;  %s1596_s13 = smov 4  }
   0xd   :  { %21 = dma.hbm_to_vmem [thread:$0]  %s1632_s0, 4096, %s16_s10, [#allocation3], %s1595_s12, %s1595_s12, %s1596_s13  }
   0xe   :  { %s1597_s16 = smov [#allocation5]  }
   0xf   :  { %s27_s17 = sshll.u32 %s1597_s16, 4  ;;  %s28_s17 = int_to_ptr.vmem [resolvable:$true] %s27_s17 }
  0x10   :  { %s1556_s18 = scalar_lea.vmem %s28_s17, 1024  ;;  %p1561_p6 = scmp.lt.s32.totalorder %s28_s17, %s28_s17 }
  0x11   :  { %p1557_p5 = scmp.ne.s32.totalorder %s28_s17, %s1556_s18  ;;  %p1562_p7 = scmp.lt.s32.totalorder %s1556_s18, %s1556_s18 }
  0x13   :  { %p1563_p8 = por %p1562_p7, %p1561_p6 }
  0x15   :  { %p1564_p9 = pnand %p1563_p8, %p1557_p5 }
  0x17   :  { %1567 = shalt.err (!%p1564_p9)
}
  0x18   :  { %33 = dma.hbm_to_vmem [thread:$0]  %s1633_s1, 1024, %s28_s17, [#allocation6], %s1595_s12, %s1595_s12, %s1596_s13  }
  0x19   :  { %1588 = dma.done.wait [#allocation3], 4096  }
  0x1a   :  { %1589 = vsyncadd [#allocation3], 4294963200 }
  0x1b   :  { %1590 = dma.done.wait [#allocation6], 1024  }
  0x1c   :  { %1591 = vsyncadd [#allocation6], 4294966272  ;;  %v1488_v0 = vld [vmem:[#allocation5 + $0x38] sm:$0xff]   ;;  %v1489_v1 = vld [vmem:[#allocation5 + $0x30] sm:$0xff]   ;;  %s1598_s0 = smov [#allocation7]  }
  0x1d   :  { %1387 = vmatprep.subr.bf16.mxu0 %v1488_v0  ;;  %1467 = vmatprep.subr.bf16.mxu1 %v1488_v0  ;;  %v1490_v2 = vld [vmem:[#allocation5 + $0x28] sm:$0xff]   ;;  %v1491_v3 = vld [vmem:[#allocation5 + $0x20] sm:$0xff]   ;;  %v1492_v6 = vld [vmem:[#allocation5 + $0x18] sm:$0xff]   ;;  %s975_s1 = sshll.u32 %s1598_s0, 4  ;;  %s976_s1 = int_to_ptr.vmem [resolvable:$true] %s975_s1 }
  0x1e   :  { %1388 = vmatpush3.bf16.msra.mxu0 %v1488_v0  ;;  %1475 = vmatpush3.bf16.msra.mxu1 %v1488_v0  ;;  %v1496_v4 = vld [vmem:[#allocation2] sm:$0xff]   ;;  %v1493_v7 = vld [vmem:[#allocation5 + $0x10] sm:$0xff]   ;;  %v1494_v8 = vld [vmem:[#allocation5 + $0x8] sm:$0xff]   ;;  %s1568_s21 = scalar_lea.vmem %s976_s1, 4096  ;;  %p1573_p11 = scmp.lt.s32.totalorder %s976_s1, %s976_s1 }
  0x1f   :  { %1389 = vmatprep.subr.bf16.mxu0 %v1489_v1  ;;  %1468 = vmatprep.subr.bf16.mxu1 %v1489_v1  ;;  %v1497_v5 = vld [vmem:[#allocation2 + $0x80] sm:$0xff]   ;;  %v1498_v10 = vld [vmem:[#allocation2 + $0x8] sm:$0xff]   ;;  %v1500_v12 = vld [vmem:[#allocation2 + $0x10] sm:$0xff]   ;;  %p1569_p10 = scmp.ne.s32.totalorder %s976_s1, %s1568_s21  ;;  %p1574_p12 = scmp.lt.s32.totalorder %s1568_s21, %s1568_s21 }
  0x20   :  { %1403 = vmatprep.mubr.bf16.mxu0 %v1496_v4  ;;  %1435 = vmatprep.mubr.bf16.mxu1 %v1497_v5  ;;  %v1495_v9 = vld [vmem:[#allocation5] sm:$0xff]   ;;  %v1499_v11 = vld [vmem:[#allocation2 + $0x88] sm:$0xff]   ;;  %v1501_v13 = vld [vmem:[#allocation2 + $0x90] sm:$0xff]  }
  0x21   :  { %v1502_v14 = vld [vmem:[#allocation2 + $0x18] sm:$0xff]   ;;  %v1504_v16 = vld [vmem:[#allocation2 + $0x20] sm:$0xff]   ;;  %v1506_v18 = vld [vmem:[#allocation2 + $0x28] sm:$0xff]   ;;  %p1575_p13 = por %p1574_p12, %p1573_p11 }
  0x22   :  { %1390 = vmatpush3.bf16.msra.mxu0 %v1489_v1  ;;  %1476 = vmatpush3.bf16.msra.mxu1 %v1489_v1  ;;  %v1503_v15 = vld [vmem:[#allocation2 + $0x98] sm:$0xff]   ;;  %v1505_v17 = vld [vmem:[#allocation2 + $0xa0] sm:$0xff]   ;;  %v1507_v19 = vld [vmem:[#allocation2 + $0xa8] sm:$0xff]  }
  0x23   :  { %1391 = vmatprep.subr.bf16.mxu0 %v1490_v2  ;;  %1469 = vmatprep.subr.bf16.mxu1 %v1490_v2  ;;  %v1508_v20 = vld [vmem:[#allocation2 + $0x30] sm:$0xff]   ;;  %v1510_v22 = vld [vmem:[#allocation2 + $0x38] sm:$0xff]   ;;  %v1512_v24 = vld [vmem:[#allocation2 + $0x40] sm:$0xff]   ;;  %p1576_p0 = pnand %p1575_p13, %p1569_p10 }
  0x24   :  { %v1509_v21 = vld [vmem:[#allocation2 + $0xb0] sm:$0xff]   ;;  %v1511_v23 = vld [vmem:[#allocation2 + $0xb8] sm:$0xff]   ;;  %v1513_v25 = vld [vmem:[#allocation2 + $0xc0] sm:$0xff]  }
  0x25   :  { %v1514_v26 = vld [vmem:[#allocation2 + $0x48] sm:$0xff]   ;;  %v1516_v28 = vld [vmem:[#allocation2 + $0x50] sm:$0xff]   ;;  %v1518_v30 = vld [vmem:[#allocation2 + $0x58] sm:$0xff]  }
  0x26   :  { %1392 = vmatpush3.bf16.msra.mxu0 %v1490_v2  ;;  %1477 = vmatpush3.bf16.msra.mxu1 %v1490_v2  ;;  %v1515_v27 = vld [vmem:[#allocation2 + $0xc8] sm:$0xff]   ;;  %v1517_v29 = vld [vmem:[#allocation2 + $0xd0] sm:$0xff]   ;;  %v1519_v31 = vld [vmem:[#allocation2 + $0xd8] sm:$0xff]  }
  0x27   :  { %1393 = vmatprep.subr.bf16.mxu0 %v1491_v3  ;;  %1470 = vmatprep.subr.bf16.mxu1 %v1491_v3  ;;  %v1520_v32 = vld [vmem:[#allocation2 + $0x60] sm:$0xff]   ;;  %v1522_v34 = vld [vmem:[#allocation2 + $0x68] sm:$0xff]   ;;  %v1524_v36 = vld [vmem:[#allocation2 + $0x70] sm:$0xff]  }
  0x28   :  { %v1521_v33 = vld [vmem:[#allocation2 + $0xe0] sm:$0xff]   ;;  %v1523_v35 = vld [vmem:[#allocation2 + $0xe8] sm:$0xff]   ;;  %v1525_v37 = vld [vmem:[#allocation2 + $0xf0] sm:$0xff]  }
  0x29   :  { %v1526_v38 = vld [vmem:[#allocation2 + $0x78] sm:$0xff]  }
  0x2a   :  { %1394 = vmatpush3.bf16.msra.mxu0 %v1491_v3  ;;  %1478 = vmatpush3.bf16.msra.mxu1 %v1491_v3  ;;  %v1527_v39 = vld [vmem:[#allocation2 + $0xf8] sm:$0xff]  }
  0x2b   :  { %1395 = vmatprep.subr.bf16.mxu0 %v1492_v6  ;;  %1471 = vmatprep.subr.bf16.mxu1 %v1492_v6 }
  0x2e   :  { %1396 = vmatpush3.bf16.msra.mxu0 %v1492_v6  ;;  %1479 = vmatpush3.bf16.msra.mxu1 %v1492_v6 }
  0x2f   :  { %1397 = vmatprep.subr.bf16.mxu0 %v1493_v7  ;;  %1472 = vmatprep.subr.bf16.mxu1 %v1493_v7 }
  0x32   :  { %1398 = vmatpush3.bf16.msra.mxu0 %v1493_v7  ;;  %1480 = vmatpush3.bf16.msra.mxu1 %v1493_v7 }
  0x33   :  { %1399 = vmatprep.subr.bf16.mxu0 %v1494_v8  ;;  %1473 = vmatprep.subr.bf16.mxu1 %v1494_v8 }
  0x36   :  { %1400 = vmatpush3.bf16.msra.mxu0 %v1494_v8  ;;  %1481 = vmatpush3.bf16.msra.mxu1 %v1494_v8 }
  0x37   :  { %1401 = vmatprep.subr.bf16.mxu0 %v1495_v9  ;;  %1474 = vmatprep.subr.bf16.mxu1 %v1495_v9 }
  0x3a   :  { %1402 = vmatpush3.bf16.msra.mxu0 %v1495_v9  ;;  %1482 = vmatpush3.bf16.msra.mxu1 %v1495_v9 }
  0x3d   :  { %1404 = vmatmul.mubr.bf16.vlgmr.msra.gmra.mxu0 %v1498_v10  ;;  %1436 = vmatmul.mubr.bf16.vlgmr.msra.gmra.mxu1 %v1499_v11 }
  0x3e   :  { %1407 = vmatprep.mubr.bf16.mxu0 %v1500_v12  ;;  %1439 = vmatprep.mubr.bf16.mxu1 %v1501_v13 }
  0x45   :  { %1408 = vmatmul.mubr.bf16.gmra.mxu0 %v1502_v14  ;;  %1440 = vmatmul.mubr.bf16.gmra.mxu1 %v1503_v15 }
  0x46   :  { %1411 = vmatprep.mubr.bf16.mxu0 %v1504_v16  ;;  %1443 = vmatprep.mubr.bf16.mxu1 %v1505_v17 }
  0x4d   :  { %1412 = vmatmul.mubr.bf16.gmra.mxu0 %v1506_v18  ;;  %1444 = vmatmul.mubr.bf16.gmra.mxu1 %v1507_v19 }
  0x4e   :  { %1415 = vmatprep.mubr.bf16.mxu0 %v1508_v20  ;;  %1447 = vmatprep.mubr.bf16.mxu1 %v1509_v21 }
  0x55   :  { %1416 = vmatmul.mubr.bf16.gmra.mxu0 %v1510_v22  ;;  %1448 = vmatmul.mubr.bf16.gmra.mxu1 %v1511_v23 }
  0x56   :  { %1419 = vmatprep.mubr.bf16.mxu0 %v1512_v24  ;;  %1451 = vmatprep.mubr.bf16.mxu1 %v1513_v25 }
  0x5d   :  { %1420 = vmatmul.mubr.bf16.gmra.mxu0 %v1514_v26  ;;  %1452 = vmatmul.mubr.bf16.gmra.mxu1 %v1515_v27 }
  0x5e   :  { %1423 = vmatprep.mubr.bf16.mxu0 %v1516_v28  ;;  %1455 = vmatprep.mubr.bf16.mxu1 %v1517_v29 }
  0x65   :  { %1424 = vmatmul.mubr.bf16.gmra.mxu0 %v1518_v30  ;;  %1456 = vmatmul.mubr.bf16.gmra.mxu1 %v1519_v31 }
  0x66   :  { %1427 = vmatprep.mubr.bf16.mxu0 %v1520_v32  ;;  %1459 = vmatprep.mubr.bf16.mxu1 %v1521_v33 }
  0x6d   :  { %1428 = vmatmul.mubr.bf16.gmra.mxu0 %v1522_v34  ;;  %1460 = vmatmul.mubr.bf16.gmra.mxu1 %v1523_v35 }
  0x6e   :  { %1431 = vmatprep.mubr.bf16.mxu0 %v1524_v36  ;;  %1463 = vmatprep.mubr.bf16.mxu1 %v1525_v37 }
  0x75   :  { %1432 = vmatmul.mubr.bf16.gmra.mxu0 %v1526_v38  ;;  %1464 = vmatmul.mubr.bf16.gmra.mxu1 %v1527_v39 }
  0xfd   :  { %v1405_v40 = vpop.f32.mrf.mxu0  ;;  %v1437_v41 = vpop.f32.mrf.mxu1 }
  0xff   :  { %v395_v42 = vpop.f32.mrf.mxu0  ;;  %v523_v43 = vpop.f32.mrf.mxu1 }
 0x101   :  { %v1406_v44 = vpop.f32.mrf.mxu0  ;;  %v1438_v45 = vpop.f32.mrf.mxu1 }
 0x102   :  { %v1164_v46 = vpack.c.bf16 %v1406_v44, %v1405_v40  ;;  %v1244_v47 = vpack.c.bf16 %v1438_v45, %v1437_v41 }
 0x103   :  { %v398_v48 = vpop.f32.mrf.mxu0  ;;  %v526_v49 = vpop.f32.mrf.mxu1 }
 0x104   :  { %1316 = vst [vmem:[#allocation7 + $0x8] sm:$0xff] %v1164_v46   ;;  %1332 = vst [vmem:[#allocation7 + $0x88] sm:$0xff] %v1244_v47   ;;  %v1159_v50 = vpack.c.bf16 %v398_v48, %v395_v42  ;;  %v1239_v51 = vpack.c.bf16 %v526_v49, %v523_v43 }
 0x105   :  { %v1409_v52 = vpop.f32.mrf.mxu0  ;;  %v1441_v53 = vpop.f32.mrf.mxu1 }
 0x106   :  { %1160 = vst [vmem:[#allocation7] sm:$0xff] %v1159_v50   ;;  %1331 = vst [vmem:[#allocation7 + $0x80] sm:$0xff] %v1239_v51  }
 0x107   :  { %v411_v54 = vpop.f32.mrf.mxu0  ;;  %v539_v55 = vpop.f32.mrf.mxu1 }
 0x109   :  { %v1410_v56 = vpop.f32.mrf.mxu0  ;;  %v1442_v57 = vpop.f32.mrf.mxu1 }
 0x10a   :  { %v1174_v58 = vpack.c.bf16 %v1410_v56, %v1409_v52  ;;  %v1254_v59 = vpack.c.bf16 %v1442_v57, %v1441_v53 }
 0x10b   :  { %v414_v60 = vpop.f32.mrf.mxu0  ;;  %v542_v61 = vpop.f32.mrf.mxu1 }
 0x10c   :  { %1318 = vst [vmem:[#allocation7 + $0x18] sm:$0xff] %v1174_v58   ;;  %1334 = vst [vmem:[#allocation7 + $0x98] sm:$0xff] %v1254_v59   ;;  %v1169_v62 = vpack.c.bf16 %v414_v60, %v411_v54  ;;  %v1249_v63 = vpack.c.bf16 %v542_v61, %v539_v55 }
 0x10d   :  { %v1413_v0 = vpop.f32.mrf.mxu0  ;;  %v1445_v1 = vpop.f32.mrf.mxu1 }
 0x10e   :  { %1317 = vst [vmem:[#allocation7 + $0x10] sm:$0xff] %v1169_v62   ;;  %1333 = vst [vmem:[#allocation7 + $0x90] sm:$0xff] %v1249_v63  }
 0x10f   :  { %v427_v2 = vpop.f32.mrf.mxu0  ;;  %v555_v3 = vpop.f32.mrf.mxu1 }
 0x111   :  { %v1414_v4 = vpop.f32.mrf.mxu0  ;;  %v1446_v5 = vpop.f32.mrf.mxu1 }
 0x112   :  { %v1184_v6 = vpack.c.bf16 %v1414_v4, %v1413_v0  ;;  %v1264_v7 = vpack.c.bf16 %v1446_v5, %v1445_v1 }
 0x113   :  { %v430_v8 = vpop.f32.mrf.mxu0  ;;  %v558_v9 = vpop.f32.mrf.mxu1 }
 0x114   :  { %1320 = vst [vmem:[#allocation7 + $0x28] sm:$0xff] %v1184_v6   ;;  %1336 = vst [vmem:[#allocation7 + $0xa8] sm:$0xff] %v1264_v7   ;;  %v1179_v10 = vpack.c.bf16 %v430_v8, %v427_v2  ;;  %v1259_v11 = vpack.c.bf16 %v558_v9, %v555_v3 }
 0x115   :  { %v1417_v12 = vpop.f32.mrf.mxu0  ;;  %v1449_v13 = vpop.f32.mrf.mxu1 }
 0x116   :  { %1319 = vst [vmem:[#allocation7 + $0x20] sm:$0xff] %v1179_v10   ;;  %1335 = vst [vmem:[#allocation7 + $0xa0] sm:$0xff] %v1259_v11  }
 0x117   :  { %v443_v14 = vpop.f32.mrf.mxu0  ;;  %v571_v15 = vpop.f32.mrf.mxu1 }
 0x119   :  { %v1418_v16 = vpop.f32.mrf.mxu0  ;;  %v1450_v17 = vpop.f32.mrf.mxu1 }
 0x11a   :  { %v1194_v18 = vpack.c.bf16 %v1418_v16, %v1417_v12  ;;  %v1274_v19 = vpack.c.bf16 %v1450_v17, %v1449_v13 }
 0x11b   :  { %v446_v20 = vpop.f32.mrf.mxu0  ;;  %v574_v21 = vpop.f32.mrf.mxu1 }
 0x11c   :  { %1322 = vst [vmem:[#allocation7 + $0x38] sm:$0xff] %v1194_v18   ;;  %1338 = vst [vmem:[#allocation7 + $0xb8] sm:$0xff] %v1274_v19   ;;  %v1189_v22 = vpack.c.bf16 %v446_v20, %v443_v14  ;;  %v1269_v23 = vpack.c.bf16 %v574_v21, %v571_v15 }
 0x11d   :  { %v1421_v24 = vpop.f32.mrf.mxu0  ;;  %v1453_v25 = vpop.f32.mrf.mxu1 }
 0x11e   :  { %1321 = vst [vmem:[#allocation7 + $0x30] sm:$0xff] %v1189_v22   ;;  %1337 = vst [vmem:[#allocation7 + $0xb0] sm:$0xff] %v1269_v23  }
 0x11f   :  { %v459_v26 = vpop.f32.mrf.mxu0  ;;  %v587_v27 = vpop.f32.mrf.mxu1 }
 0x121   :  { %v1422_v28 = vpop.f32.mrf.mxu0  ;;  %v1454_v29 = vpop.f32.mrf.mxu1 }
 0x122   :  { %v1204_v30 = vpack.c.bf16 %v1422_v28, %v1421_v24  ;;  %v1284_v31 = vpack.c.bf16 %v1454_v29, %v1453_v25 }
 0x123   :  { %v462_v32 = vpop.f32.mrf.mxu0  ;;  %v590_v33 = vpop.f32.mrf.mxu1 }
 0x124   :  { %1324 = vst [vmem:[#allocation7 + $0x48] sm:$0xff] %v1204_v30   ;;  %1340 = vst [vmem:[#allocation7 + $0xc8] sm:$0xff] %v1284_v31   ;;  %v1199_v34 = vpack.c.bf16 %v462_v32, %v459_v26  ;;  %v1279_v35 = vpack.c.bf16 %v590_v33, %v587_v27 }
 0x125   :  { %v1425_v36 = vpop.f32.mrf.mxu0  ;;  %v1457_v37 = vpop.f32.mrf.mxu1 }
 0x126   :  { %1323 = vst [vmem:[#allocation7 + $0x40] sm:$0xff] %v1199_v34   ;;  %1339 = vst [vmem:[#allocation7 + $0xc0] sm:$0xff] %v1279_v35  }
 0x127   :  { %v475_v38 = vpop.f32.mrf.mxu0  ;;  %v603_v39 = vpop.f32.mrf.mxu1 }
 0x129   :  { %v1426_v40 = vpop.f32.mrf.mxu0  ;;  %v1458_v41 = vpop.f32.mrf.mxu1 }
 0x12a   :  { %v1214_v42 = vpack.c.bf16 %v1426_v40, %v1425_v36  ;;  %v1294_v43 = vpack.c.bf16 %v1458_v41, %v1457_v37 }
 0x12b   :  { %v478_v44 = vpop.f32.mrf.mxu0  ;;  %v606_v45 = vpop.f32.mrf.mxu1 }
 0x12c   :  { %1326 = vst [vmem:[#allocation7 + $0x58] sm:$0xff] %v1214_v42   ;;  %1342 = vst [vmem:[#allocation7 + $0xd8] sm:$0xff] %v1294_v43   ;;  %v1209_v46 = vpack.c.bf16 %v478_v44, %v475_v38  ;;  %v1289_v47 = vpack.c.bf16 %v606_v45, %v603_v39 }
 0x12d   :  { %v1429_v48 = vpop.f32.mrf.mxu0  ;;  %v1461_v49 = vpop.f32.mrf.mxu1 }
 0x12e   :  { %1325 = vst [vmem:[#allocation7 + $0x50] sm:$0xff] %v1209_v46   ;;  %1341 = vst [vmem:[#allocation7 + $0xd0] sm:$0xff] %v1289_v47  }
 0x12f   :  { %v491_v50 = vpop.f32.mrf.mxu0  ;;  %v619_v51 = vpop.f32.mrf.mxu1 }
 0x131   :  { %v1430_v52 = vpop.f32.mrf.mxu0  ;;  %v1462_v53 = vpop.f32.mrf.mxu1 }
 0x132   :  { %v1224_v54 = vpack.c.bf16 %v1430_v52, %v1429_v48  ;;  %v1304_v55 = vpack.c.bf16 %v1462_v53, %v1461_v49 }
 0x133   :  { %v494_v56 = vpop.f32.mrf.mxu0  ;;  %v622_v57 = vpop.f32.mrf.mxu1 }
 0x134   :  { %1328 = vst [vmem:[#allocation7 + $0x68] sm:$0xff] %v1224_v54   ;;  %1344 = vst [vmem:[#allocation7 + $0xe8] sm:$0xff] %v1304_v55   ;;  %v1219_v58 = vpack.c.bf16 %v494_v56, %v491_v50  ;;  %v1299_v59 = vpack.c.bf16 %v622_v57, %v619_v51 }
 0x135   :  { %v1433_v60 = vpop.f32.mrf.mxu0  ;;  %v1465_v61 = vpop.f32.mrf.mxu1 }
 0x136   :  { %1327 = vst [vmem:[#allocation7 + $0x60] sm:$0xff] %v1219_v58   ;;  %1343 = vst [vmem:[#allocation7 + $0xe0] sm:$0xff] %v1299_v59  }
 0x137   :  { %v507_v62 = vpop.f32.mrf.mxu0  ;;  %v635_v63 = vpop.f32.mrf.mxu1 }
 0x139   :  { %v1434_v0 = vpop.f32.mrf.mxu0  ;;  %v1466_v1 = vpop.f32.mrf.mxu1 }
 0x13a   :  { %v1234_v2 = vpack.c.bf16 %v1434_v0, %v1433_v60  ;;  %v1314_v3 = vpack.c.bf16 %v1466_v1, %v1465_v61 }
 0x13b   :  { %v510_v4 = vpop.f32.mrf.mxu0  ;;  %v638_v5 = vpop.f32.mrf.mxu1 }
 0x13c   :  { %1330 = vst [vmem:[#allocation7 + $0x78] sm:$0xff] %v1234_v2   ;;  %1346 = vst [vmem:[#allocation7 + $0xf8] sm:$0xff] %v1314_v3   ;;  %v1229_v6 = vpack.c.bf16 %v510_v4, %v507_v62  ;;  %v1309_v7 = vpack.c.bf16 %v638_v5, %v635_v63 }
 0x13e   :  { %1329 = vst [vmem:[#allocation7 + $0x70] sm:$0xff] %v1229_v6   ;;  %1345 = vst [vmem:[#allocation7 + $0xf0] sm:$0xff] %v1309_v7  }
 0x13f   :  { %1579 = shalt.err (!%p1576_p0)
}
 0x140   :  { %981 = dma.vmem_to_hbm [thread:$0]  %s976_s1, 4096, %s1634_s2, [#allocation4], %s1595_s12, %s1595_s12, %s1596_s13  }
 0x141   :  { %1592 = dma.done.wait [#allocation4], 4096  }
 0x142   :  { %1593 = vsyncadd [#allocation4], 4294963200 }
 0x143   :  { %985 = vsyncpa [#allocation3], 1 }
 0x144   :  { %986 = vsyncpa [#allocation6], 1 }
 0x145   :  { %987 = vsyncpa [#allocation4], 1 }

</bundles_post_ra>
